<compile_context>
chip_gen: v6e
topology: v6e:2x2x1
jax: 0.10.0
libtpu: 0.0.40
codegen_flags: <defaults>
</compile_context>

<pallas_src>
import jax
import jax.numpy as jnp
from jax.experimental import pallas as pl
from jax.experimental.pallas import tpu as pltpu

LANE = 128
MAX_COLS = LANE * 64               # widest lane extent considered (8192)
TARGET_BLOCK_BYTES = 4 << 20       # 4 MiB/buffer; in+out double-buffered = 16 MiB


def _identity_kernel(x_ref, o_ref):
    # Pure whole-tile copy; the kernel is HBM-bandwidth bound, so no extra work.
    o_ref[...] = x_ref[...]


def _sublane_for(dtype):
    # Native packed sublane counts: 8 rows for 32-bit, 16 for 16-bit, 32 for 8-bit.
    itemsize = jnp.dtype(dtype).itemsize
    return {4: 8, 2: 16, 1: 32}.get(itemsize, 8)


def _pallas_copy_2d(x2d, tile_rows):
    rows, cols = x2d.shape
    grid = (pl.cdiv(rows, tile_rows),)
    return pl.pallas_call(
        _identity_kernel,
        out_shape=jax.ShapeDtypeStruct((rows, cols), x2d.dtype),
        grid_spec=pltpu.PrefetchScalarGridSpec(
            num_scalar_prefetch=0,
            grid=grid,
            in_specs=[pl.BlockSpec((tile_rows, cols), lambda i: (i, 0))],
            out_specs=pl.BlockSpec((tile_rows, cols), lambda i: (i, 0)),
        ),
        compiler_params=pltpu.CompilerParams(
            dimension_semantics=("parallel",),
            vmem_limit_bytes=32 << 20,
        ),
    )(x2d)


def _tiled_copy_flat(flat):
    """Copy a 1-D array whose length is a multiple of 128 (no padding needed)."""
    n = flat.shape[0]
    itemsize = jnp.dtype(flat.dtype).itemsize
    sublane = _sublane_for(flat.dtype)

    # Lane-dense layout: widest lane extent (multiple of 128, <= 8192) that
    # divides the flat length, so stores are wide, unmasked vst's.
    cols = LANE
    for k in (64, 32, 16, 8, 4, 2, 1):
        if n % (LANE * k) == 0:
            cols = LANE * k
            break
    rows = n // cols

    # Largest sublane-aligned row tile under the per-buffer VMEM budget.
    max_tile_rows = (TARGET_BLOCK_BYTES // (cols * itemsize)) // sublane * sublane
    max_tile_rows = max(sublane, max_tile_rows)
    tile_rows = rows if rows <= max_tile_rows else max_tile_rows

    out2d = _pallas_copy_2d(flat.reshape(rows, cols), tile_rows)
    return out2d.reshape(n)


def identity_pallas(x):
    """Identity forward pass (y = x) routed through a Pallas TPU copy kernel."""
    n = x.size
    if n == 0:
        return x  # nothing to copy

    flat = x.reshape(-1)
    itemsize = jnp.dtype(x.dtype).itemsize

    if n % LANE == 0:
        # Common case (ViT-style tensors): no padding, no post-slice.
        return _tiled_copy_flat(flat).reshape(x.shape)

    if n * itemsize <= TARGET_BLOCK_BYTES:
        # Small, non-128-aligned: a single full-extent block, still no padding.
        out = _pallas_copy_2d(flat.reshape(1, n), tile_rows=1)
        return out.reshape(x.shape)

    # Large and non-128-aligned: one jnp.pad to an aligned length, tiled copy, slice.
    pad = (-n) % (_sublane_for(x.dtype) * LANE)
    out = _tiled_copy_flat(jnp.pad(flat, (0, pad)))[:n]
    return out.reshape(x.shape)


if __name__ == "__main__":
    key = jax.random.PRNGKey(0)
    # Small NCHW input consistent with the ViT pipeline that owns this module.
    x = jax.random.normal(key, (2, 4, 16, 16), dtype=jnp.float32)

    identity_fn = jax.jit(identity_pallas)
    y = jax.block_until_ready(identity_fn(x))

    assert y.shape == x.shape, (y.shape, x.shape)
    assert y.dtype == x.dtype, (y.dtype, x.dtype)
    assert jnp.array_equal(y, x), "Identity kernel output mismatch"

    print("KERNEL_OK")
</pallas_src>

<mosaic_0001>
module attributes {stable_mosaic.version = 11 : i64} {
  func.func @_identity_kernel(%arg0: i32, %arg1: memref<1x2048xf32, #tpu.memory_space<vmem>>, %arg2: memref<1x2048xf32, #tpu.memory_space<vmem>>) attributes {dimension_semantics = [#tpu.dimension_semantics<parallel>], iteration_bounds = array<i64: 1>, scalar_prefetch = 0 : i64, scratch_operands = 0 : i64, tpu.core_type = #tpu.core_type<tc>, window_params = [{transform_indices = @transform_0, window_bounds = array<i64: 1, 2048>}, {transform_indices = @transform_1, window_bounds = array<i64: 1, 2048>}]} {
    %c0 = arith.constant 0 : index
    %c0_0 = arith.constant 0 : index
    %0 = vector.load %arg1[%c0, %c0_0] : memref<1x2048xf32, #tpu.memory_space<vmem>>, vector<1x2048xf32>
    %c0_1 = arith.constant 0 : index
    %c0_2 = arith.constant 0 : index
    %1 = vector.load %arg2[%c0_1, %c0_2] : memref<1x2048xf32, #tpu.memory_space<vmem>>, vector<1x2048xf32>
    tpu.vector_store %arg2[%c0_1, %c0_2], %0 {strides = array<i32>} : memref<1x2048xf32, #tpu.memory_space<vmem>>, vector<1x2048xf32>,
    return
  }
  func.func @transform_0(%arg0: i32) -> (i32, i32) {
    %c0_i32 = arith.constant 0 : i32
    %c0_i32_0 = arith.constant 0 : i32
    return %arg0, %c0_i32 : i32, i32
  }
  func.func @transform_1(%arg0: i32) -> (i32, i32) {
    %c0_i32 = arith.constant 0 : i32
    %c0_i32_0 = arith.constant 0 : i32
    return %arg0, %c0_i32 : i32, i32
  }
}

</mosaic_0001>

<bundles_post_ra>
// kernel: identity_pallas.1
= control target key start
LH: loop header
LB: loop body
LE: loop exit
PB: predicated region body
PF: predicated region fallthrough
CT: control target
= control target key end

     0   :  { %s38_s0 = inlined_call_operand.vmem [shape: f32[1,2048], index: 0, kind: input, shape index: {}]   ;;  %s39_s1 = inlined_call_operand.vmem [shape: f32[1,2048], index: 1, kind: output, shape index: {}]  }
   0x1   :  { %v8_v0 = vld [vmem:[%s38_s0] sm:$0xff]  ;;  %v9_v1 = vld [vmem:[%s38_s0 + $0x8] sm:$0xff] }
   0x2   :  { %10 = vst [vmem:[%s39_s1] sm:$0xff] %v8_v0  ;;  %11 = vst [vmem:[%s39_s1 + $0x8] sm:$0xff] %v9_v1 }

</bundles_post_ra>
